<compile_context>
chip_gen: v7x
topology: tpu7x:2x2x1
jax: 0.10.0
libtpu: 0.0.40
codegen_flags: <defaults>
</compile_context>

<pallas_src>
import math

import jax
import jax.numpy as jnp
import numpy as np
from jax.experimental import pallas as pl
from jax.experimental.pallas import tpu as pltpu


def _identity_kernel(x_ref, o_ref):
    # DummyTransformerBlock applies no transformation: pure tile copy.
    o_ref[...] = x_ref[...]


def _gen_tile_and_vmem():
    """Per-generation (tile_bytes, vmem_limit_bytes)."""
    try:
        kind = jax.devices()[0].device_kind.lower()
    except Exception:  # pragma: no cover - defensive
        kind = ""
    if "v5" in kind:
        # v5e default scoped VMEM is 16 MiB; 2 MiB tiles -> ~8 MiB peak.
        return 2 << 20, 32 << 20
    if "v7" in kind:
        # v7x: 64 MiB physical VMEM per TC; 8 MiB tiles -> ~32 MiB peak.
        return 8 << 20, 48 << 20
    if "v6" in kind:
        # v6e: 128 MiB physical; plenty of headroom for 8 MiB tiles.
        return 8 << 20, 48 << 20
    return 4 << 20, 32 << 20


def _pick_lane_width(n_elems: int, min_rows: int):
    """Widest lane-dense C (multiple of 128) keeping rows sublane-aligned."""
    for c in (4096, 2048, 1024, 512, 256, 128):
        if n_elems % c == 0 and (n_elems // c) % min_rows == 0:
            return c
    return None


def _pick_tile_rows(R: int, C: int, itemsize: int, min_rows: int,
                    tile_bytes: int) -> int:
    """Largest aligned row tile under the VMEM budget, keeping grid >= 2."""
    target_rows = max(min_rows, tile_bytes // max(1, C * itemsize))
    tile_rows = min_rows
    while (tile_rows * 2 <= target_rows
           and R % (tile_rows * 2) == 0
           and R // (tile_rows * 2) >= 2):
        tile_rows *= 2
    return tile_rows


def dummy_transformer_block(x: jax.Array) -> jax.Array:
    """Pallas implementation of DummyTransformerBlock.forward (identity).

    Note: since the op is an exact identity on an immutable JAX array, the
    truly zero-cost implementation is simply `return x`; the tiled copy below
    is kept so the forward pass is materialized through a Pallas kernel.
    """
    orig_shape = x.shape
    n = math.prod(orig_shape)
    itemsize = jnp.dtype(x.dtype).itemsize
    # Sublane alignment per dtype pack factor: 8 (f32), 16 (bf16), 32 (int8).
    min_rows = 8 * max(1, 4 // itemsize)

    tile_bytes, vmem_limit = _gen_tile_and_vmem()

    # Pick a lane-dense [R, C] view; pad (copy + slice) ragged inputs so the
    # tiled path always applies and no whole-array block ever hits VMEM.
    C = _pick_lane_width(n, min_rows)
    pad = 0
    n_eff = n
    if C is None:
        quantum = min_rows * 128
        n_eff = ((n + quantum - 1) // quantum) * quantum
        pad = n_eff - n
        C = _pick_lane_width(n_eff, min_rows)  # always succeeds now

    R = n_eff // C
    tile_rows = _pick_tile_rows(R, C, itemsize, min_rows, tile_bytes)
    grid = (R // tile_rows,)

    flat = x.reshape(-1)
    if pad:
        flat = jnp.pad(flat, (0, pad))
    x2 = flat.reshape(R, C)

    out2 = pl.pallas_call(
        _identity_kernel,
        out_shape=jax.ShapeDtypeStruct((R, C), x2.dtype),
        grid_spec=pltpu.PrefetchScalarGridSpec(
            num_scalar_prefetch=0,
            grid=grid,
            in_specs=[pl.BlockSpec((tile_rows, C), lambda i: (i, 0))],
            out_specs=pl.BlockSpec((tile_rows, C), lambda i: (i, 0)),
        ),
        compiler_params=pltpu.CompilerParams(
            # Row grid shards across both TensorCores on v7x; no-op elsewhere.
            dimension_semantics=("parallel",),
            vmem_limit_bytes=vmem_limit,
        ),
    )(x2)

    flat_out = out2.reshape(-1)
    if pad:
        flat_out = flat_out[:n]
    return flat_out.reshape(orig_shape)


if __name__ == "__main__":
    # cfg would normally hold emb_dim etc., but the dummy block ignores it.
    key = jax.random.PRNGKey(0)
    B, S, E = 2, 8, 32
    x = jax.random.normal(key, (B, S, E), dtype=jnp.float32)

    y = dummy_transformer_block(x)
    jax.block_until_ready(y)

    assert y.shape == (B, S, E) and y.dtype == jnp.float32
    # No aliasing/donation: x is still live and readable after the call.
    assert np.array_equal(jax.device_get(y), jax.device_get(x))
    print("KERNEL_OK")
</pallas_src>

<mosaic_0001>
module attributes {stable_mosaic.version = 11 : i64} {
  func.func @_identity_kernel(%arg0: i32, %arg1: memref<8x128xf32, #tpu.memory_space<vmem>>, %arg2: memref<8x128xf32, #tpu.memory_space<vmem>>) attributes {dimension_semantics = [#tpu.dimension_semantics<parallel>], iteration_bounds = array<i64: 1>, scalar_prefetch = 0 : i64, scratch_operands = 0 : i64, tpu.core_type = #tpu.core_type<tc>, window_params = [{transform_indices = @transform_0, window_bounds = array<i64: 8, 128>}, {transform_indices = @transform_1, window_bounds = array<i64: 8, 128>}]} {
    %c0 = arith.constant 0 : index
    %c0_0 = arith.constant 0 : index
    %0 = vector.load %arg1[%c0, %c0_0] : memref<8x128xf32, #tpu.memory_space<vmem>>, vector<8x128xf32>
    %c0_1 = arith.constant 0 : index
    %c0_2 = arith.constant 0 : index
    %1 = vector.load %arg2[%c0_1, %c0_2] : memref<8x128xf32, #tpu.memory_space<vmem>>, vector<8x128xf32>
    tpu.vector_store %arg2[%c0_1, %c0_2], %0 {strides = array<i32>} : memref<8x128xf32, #tpu.memory_space<vmem>>, vector<8x128xf32>,
    return
  }
  func.func @transform_0(%arg0: i32) -> (i32, i32) {
    %c0_i32 = arith.constant 0 : i32
    %c0_i32_0 = arith.constant 0 : i32
    return %arg0, %c0_i32 : i32, i32
  }
  func.func @transform_1(%arg0: i32) -> (i32, i32) {
    %c0_i32 = arith.constant 0 : i32
    %c0_i32_0 = arith.constant 0 : i32
    return %arg0, %c0_i32 : i32, i32
  }
}

</mosaic_0001>

<bundles_post_ra>
// kernel: tpu_custom_call.1
= control target key start
LH: loop header
LB: loop body
LE: loop exit
PB: predicated region body
PF: predicated region fallthrough
CT: control target
= control target key end

     0   :  { %6 = vsyncpa [#allocation3], 0  ;;  %s124_s0 = inlined_call_operand.hbm [shape: f32[8,128], index: 0, kind: input, shape index: {}]   ;;  %s125_s1 = inlined_call_operand.hbm [shape: f32[8,128], index: 1, kind: output, shape index: {}]  }
   0x1   :  { %7 = vsyncpa [#allocation4], 0  ;;  %s88_s6 = smov [#allocation2]   ;;  %s40_s10 = scalar_lea.hbm %s124_s0, 128 }
   0x2   :  { %s14_s7 = sshll.u32 %s88_s6, 4  ;;  %p41_p0 = scmp.ne.s32.totalorder %s124_s0, %s40_s10  ;;  %s15_s7 = int_to_ptr.vmem [resolvable:$true] %s14_s7 }
   0x3   :  { %p44_p1 = scmp.lt.u32.totalorder %s40_s10, %s124_s0 }
   0x5   :  { %p46_p2 = pnand %p44_p1, %p41_p0 }
   0x7   :  { %49 = shalt.err (!%p46_p2)
}
   0x8   :  { %s50_s15 = scalar_lea.vmem %s15_s7, 128  ;;  %p55_p4 = scmp.lt.s32.totalorder %s15_s7, %s15_s7 }
   0x9   :  { %p51_p3 = scmp.ne.s32.totalorder %s15_s7, %s50_s15  ;;  %p56_p5 = scmp.lt.s32.totalorder %s50_s15, %s50_s15 }
   0xb   :  { %p57_p6 = por %p56_p5, %p55_p4 }
   0xd   :  { %p58_p7 = pnand %p57_p6, %p51_p3 }
   0xf   :  { %61 = shalt.err (!%p58_p7)
}
  0x10   :  { %17 = dma.hbm_to_vmem [thread:$0]  %s124_s0, 128, %s15_s7, [#allocation3]  }
  0x11   :  { %84 = dma.done.wait [#allocation3], 128  }
  0x12   :  { %85 = vsyncadd [#allocation3], 4294967168  ;;  %s89_s18 = smov [#allocation5]   ;;  %v21_v0 = vld [vmem:[#allocation2] sm:$0xff] }
  0x13   :  { %s29_s19 = sshll.u32 %s89_s18, 4  ;;  %22 = vst [vmem:[#allocation5] sm:$0xff] %v21_v0  ;;  %s30_s19 = int_to_ptr.vmem [resolvable:$true] %s29_s19 }
  0x14   :  { %s62_s20 = scalar_lea.vmem %s30_s19, 128  ;;  %p67_p9 = scmp.lt.s32.totalorder %s30_s19, %s30_s19 }
  0x15   :  { %p63_p8 = scmp.ne.s32.totalorder %s30_s19, %s62_s20  ;;  %p68_p10 = scmp.lt.s32.totalorder %s62_s20, %s62_s20 }
  0x17   :  { %p69_p11 = por %p68_p10, %p67_p9 }
  0x19   :  { %p70_p12 = pnand %p69_p11, %p63_p8 }
  0x1b   :  { %73 = shalt.err (!%p70_p12)
}
  0x1c   :  { %s74_s23 = scalar_lea.hbm %s125_s1, 128 }
  0x1d   :  { %p75_p13 = scmp.ne.s32.totalorder %s125_s1, %s74_s23  ;;  %p78_p0 = scmp.lt.u32.totalorder %s74_s23, %s125_s1 }
  0x1f   :  { %p80_p1 = pnand %p78_p0, %p75_p13 }
  0x21   :  { %83 = shalt.err (!%p80_p1)
}
  0x22   :  { %32 = dma.vmem_to_hbm [thread:$0]  %s30_s19, 128, %s125_s1, [#allocation4]  }
  0x23   :  { %86 = dma.done.wait [#allocation4], 128  }
  0x24   :  { %87 = vsyncadd [#allocation4], 4294967168 }
  0x25   :  { %36 = vsyncpa [#allocation3], 1 }
  0x26   :  { %37 = vsyncpa [#allocation4], 1 }

</bundles_post_ra>
